<compile_context>
chip_gen: v5e
topology: v5e:2x2
jax: 0.10.0
libtpu: 0.0.40
codegen_flags: <defaults>
</compile_context>

<pallas_src>
import functools

import jax
import jax.numpy as jnp
from jax import lax
from jax.experimental import pallas as pl
from jax.experimental.pallas import tpu as pltpu

BN_EPS = 1e-5
LANE = 128


def _round_up(c, m=LANE):
    return ((c + m - 1) // m) * m


# ----------------------------- Pallas kernel -------------------------------

def _mm_bn_kernel(*refs, relu, has_residual):
    """Fused GEMM + BN scale/bias (+ residual) (+ ReLU) with f32 K-accumulation."""
    if has_residual:
        a_ref, w_ref, s_ref, b_ref, r_ref, o_ref, acc_ref = refs
    else:
        a_ref, w_ref, s_ref, b_ref, o_ref, acc_ref = refs
        r_ref = None

    k = pl.program_id(2)

    @pl.when(k == 0)
    def _():
        acc_ref[...] = jnp.zeros_like(acc_ref)

    acc_ref[...] += jnp.dot(a_ref[...], w_ref[...],
                            preferred_element_type=jnp.float32)

    @pl.when(k == pl.num_programs(2) - 1)
    def _():
        out = acc_ref[...] * s_ref[...] + b_ref[...]
        if has_residual:
            out = out + r_ref[...].astype(jnp.float32)
        if relu:
            out = jnp.maximum(out, 0.0)
        o_ref[...] = out.astype(o_ref.dtype)


def _pick_tm(m):
    for t in (512, 256, 128):
        if m % t == 0:
            return t
    return m  # small M: use the full (already tiny) extent


def _pick_tk(k):
    # K tile must be a multiple of 128 (lane dim of A) unless it is the full K.
    for t in (512, 384, 256, 128):
        if k > t and k % t == 0:
            return t
    return k


def _vmem_limit_bytes(tm, tn, tk, has_res):
    ins = tm * tk * 2 + tk * tn * 2 + 2 * tn * 4      # A + W + scale/bias (bytes)
    if has_res:
        ins += tm * tn * 2
    outs = tm * tn * 2
    acc = tm * tn * 4
    est = 2 * (ins + outs) + acc                      # double-buffered + scratch
    return int(min(max(4 * est, 16 * 1024 * 1024), 48 * 1024 * 1024))


def matmul_bn(a, w, scale, bias, *, relu, residual=None):
    """out = act((a @ w) * scale + bias [+ residual]) via one tiled Pallas kernel."""
    M, K = a.shape
    K2, N = w.shape
    assert K == K2 and N % LANE == 0, (a.shape, w.shape)

    tm = _pick_tm(M)
    tn = LANE
    tk = _pick_tk(K)
    grid = (M // tm, N // tn, K // tk)

    s2 = scale.reshape(1, N).astype(jnp.float32)
    b2 = bias.reshape(1, N).astype(jnp.float32)

    in_specs = [
        pl.BlockSpec((tm, tk), lambda i, j, k: (i, k)),   # A streamed over M and K
        pl.BlockSpec((tk, tn), lambda i, j, k: (k, j)),   # W streamed over K and N
        pl.BlockSpec((1, tn), lambda i, j, k: (0, j)),    # BN scale tile
        pl.BlockSpec((1, tn), lambda i, j, k: (0, j)),    # BN bias tile
    ]
    args = [a.astype(jnp.bfloat16), w.astype(jnp.bfloat16), s2, b2]

    has_res = residual is not None
    if has_res:
        in_specs.append(pl.BlockSpec((tm, tn), lambda i, j, k: (i, j)))
        args.append(residual.astype(jnp.bfloat16))

    kernel = functools.partial(_mm_bn_kernel, relu=relu, has_residual=has_res)

    return pl.pallas_call(
        kernel,
        out_shape=jax.ShapeDtypeStruct((M, N), jnp.bfloat16),
        grid=grid,
        in_specs=in_specs,
        out_specs=pl.BlockSpec((tm, tn), lambda i, j, k: (i, j)),
        scratch_shapes=[pltpu.VMEM((tm, tn), jnp.float32)],
        compiler_params=pltpu.CompilerParams(
            dimension_semantics=("parallel", "parallel", "arbitrary"),
            vmem_limit_bytes=_vmem_limit_bytes(tm, tn, tk, has_res)),
    )(*args)


# ------------------------------ JAX glue -----------------------------------

def im2col(x, kh, kw, stride, pad):
    """Patch extraction (bf16) for the 3x3 convs; K ordering = (kh, kw, cin)."""
    B, H, W, C = x.shape
    if pad:
        x = jnp.pad(x, ((0, 0), (pad, pad), (pad, pad), (0, 0)))
    Hp, Wp = H + 2 * pad, W + 2 * pad
    Ho = (Hp - kh) // stride + 1
    Wo = (Wp - kw) // stride + 1
    cols = []
    for i in range(kh):
        for j in range(kw):
            cols.append(x[:, i:i + stride * (Ho - 1) + 1:stride,
                          j:j + stride * (Wo - 1) + 1:stride, :])
    patches = jnp.concatenate(cols, axis=-1)          # (B, Ho, Wo, kh*kw*C)
    return patches.reshape(B * Ho * Wo, kh * kw * C), (B, Ho, Wo)


def conv_bn(x, w, scale, bias, *, k, stride, pad, relu, residual=None):
    """Conv2d(no bias) + BN (+ residual) (+ ReLU), fused in the Pallas GEMM."""
    if k == 1:
        if stride > 1:
            x = x[:, ::stride, ::stride, :]
        B, Ho, Wo, C = x.shape
        a = x.reshape(B * Ho * Wo, C)
    else:
        a, (B, Ho, Wo) = im2col(x, k, k, stride, pad)
    res2 = None if residual is None else residual.reshape(B * Ho * Wo, -1)
    out = matmul_bn(a, w, scale, bias, relu=relu, residual=res2)
    return out.reshape(B, Ho, Wo, -1)


# --------------------------- parameter building ----------------------------

def make_conv_w(key, cin, cout, k):
    # kaiming-normal-ish init; layout is (kh, kw, cin, cout) flattened on K to match
    # the im2col tap ordering.  NOTE: loading PyTorch OIHW weights requires
    # w_torch.transpose(2, 3, 1, 0) before flattening, or results will be wrong.
    fan_out = cout * k * k
    std = (2.0 / fan_out) ** 0.5
    w_nat = std * jax.random.normal(key, (k * k, cin, cout), dtype=jnp.float32)
    cin_p, cout_p = _round_up(cin), _round_up(cout)
    w = jnp.zeros((k * k, cin_p, cout_p), jnp.float32)
    w = w.at[:, :cin, :cout].set(w_nat)
    return w.reshape(k * k * cin_p, cout_p)


def make_bn(cout):
    gamma = jnp.ones((cout,), jnp.float32)
    beta = jnp.zeros((cout,), jnp.float32)
    mean = jnp.zeros((cout,), jnp.float32)
    var = jnp.ones((cout,), jnp.float32)
    scale = gamma / jnp.sqrt(var + BN_EPS)
    bias = beta - mean * scale
    cout_p = _round_up(cout)
    scale = jnp.zeros((cout_p,), jnp.float32).at[:cout].set(scale)
    bias = jnp.zeros((cout_p,), jnp.float32).at[:cout].set(bias)
    return scale, bias


def make_bottleneck_params(key, inplanes, planes, out_c, stride):
    k1, k2, k3, kd = jax.random.split(key, 4)
    return {
        "w1": make_conv_w(k1, inplanes, planes, 1), "bn1": make_bn(planes),
        "w2": make_conv_w(k2, planes, planes, 3),   "bn2": make_bn(planes),
        "w3": make_conv_w(k3, planes, out_c, 1),    "bn3": make_bn(out_c),
        "wd": make_conv_w(kd, inplanes, out_c, 1),  "bnd": make_bn(out_c),
        "stride": stride,
    }


def make_anet_params(key, in_channel, out_channel):
    cc = [32, 64, 64, 64]
    e = 2
    blocks_cfg = [
        # (inplanes, planes, block-output channels == downsample output channels)
        (in_channel, cc[0], cc[0] * e),
        (cc[0] * e,  cc[1], cc[1] * e),
        (cc[1] * e,  cc[2], cc[2] * e),
        (cc[2] * e,  cc[3], cc[3] * e),
        (cc[3] * e,  out_channel // e, out_channel),
    ]
    keys = jax.random.split(key, len(blocks_cfg))
    blocks = [make_bottleneck_params(k, cin, planes, outc, 2)
              for k, (cin, planes, outc) in zip(keys, blocks_cfg)]
    return {"blocks": blocks}


# ------------------------------- forward -----------------------------------

def bottleneck_forward(x, p):
    stride = p["stride"]
    out = conv_bn(x, p["w1"], *p["bn1"], k=1, stride=1, pad=0, relu=True)
    out = conv_bn(out, p["w2"], *p["bn2"], k=3, stride=stride, pad=1, relu=True)
    identity = conv_bn(x, p["wd"], *p["bnd"], k=1, stride=stride, pad=0, relu=False)
    # conv3 + bn3 + residual add + relu, all fused in one Pallas kernel
    out = conv_bn(out, p["w3"], *p["bn3"], k=1, stride=1, pad=0, relu=True,
                  residual=identity)
    return out


def anet_forward(x_nchw, params, out_channel):
    x = jnp.transpose(x_nchw, (0, 2, 3, 1)).astype(jnp.float32)   # NCHW -> NHWC
    C = x.shape[-1]
    x = jnp.pad(x, ((0, 0), (0, 0), (0, 0), (0, _round_up(C) - C)))
    x = x.astype(jnp.bfloat16)
    for blk in params["blocks"]:
        x = bottleneck_forward(x, blk)
    x = x[..., :out_channel].astype(jnp.float32)
    return jnp.transpose(x, (0, 3, 1, 2))                         # NHWC -> NCHW


# --------------------- lax.conv reference (sanity check) --------------------

def _reference_conv_bn(x, w_mat, scale, bias, *, k, stride, pad, relu, residual=None):
    C = x.shape[-1]
    N = w_mat.shape[-1]
    w_hwio = w_mat.reshape(k, k, C, N).astype(jnp.bfloat16)
    y = lax.conv_general_dilated(
        x.astype(jnp.bfloat16), w_hwio,
        window_strides=(stride, stride),
        padding=[(pad, pad), (pad, pad)],
        dimension_numbers=("NHWC", "HWIO", "NHWC"),
        preferred_element_type=jnp.float32)
    y = y * scale.reshape(1, 1, 1, N) + bias.reshape(1, 1, 1, N)
    if residual is not None:
        y = y + residual.astype(jnp.float32)
    if relu:
        y = jnp.maximum(y, 0.0)
    return y.astype(jnp.bfloat16)


def _reference_bottleneck(x, p):
    s = p["stride"]
    out = _reference_conv_bn(x, p["w1"], *p["bn1"], k=1, stride=1, pad=0, relu=True)
    out = _reference_conv_bn(out, p["w2"], *p["bn2"], k=3, stride=s, pad=1, relu=True)
    idn = _reference_conv_bn(x, p["wd"], *p["bnd"], k=1, stride=s, pad=0, relu=False)
    out = _reference_conv_bn(out, p["w3"], *p["bn3"], k=1, stride=1, pad=0, relu=True,
                             residual=idn)
    return out


# --------------------------------- main -------------------------------------

if __name__ == "__main__":
    key = jax.random.PRNGKey(0)
    k_in, k_params = jax.random.split(key)

    IN_C, OUT_C = 4, 128
    # NCHW input; 32x32 spatial so the five stride-2 blocks leave a 1x1 map.
    x = jax.random.normal(k_in, (2, IN_C, 32, 32), dtype=jnp.float32)

    params = make_anet_params(k_params, IN_C, OUT_C)

    # Correctness spot-check: first bottleneck vs a lax.conv reference (same bf16
    # inputs/weights), so the backbone numerics are validated, not just finiteness.
    x_nhwc = jnp.transpose(x, (0, 2, 3, 1))
    x_pad = jnp.pad(x_nhwc, ((0, 0), (0, 0), (0, 0),
                             (0, _round_up(IN_C) - IN_C))).astype(jnp.bfloat16)
    got = bottleneck_forward(x_pad, params["blocks"][0]).astype(jnp.float32)
    ref = _reference_bottleneck(x_pad, params["blocks"][0]).astype(jnp.float32)
    err = float(jnp.max(jnp.abs(got - ref)))
    rmax = float(jnp.max(jnp.abs(ref))) + 1e-6
    assert err <= 5e-2 * rmax + 5e-2, ("block0 mismatch", err, rmax)

    fwd = jax.jit(lambda inp: anet_forward(inp, params, OUT_C))
    out = jax.block_until_ready(fwd(x))

    assert out.shape == (2, OUT_C, 1, 1), out.shape
    assert bool(jnp.all(jnp.isfinite(out)))
    print("KERNEL_OK")
</pallas_src>

<mosaic_0001>
module attributes {stable_mosaic.version = 11 : i64} {
  func.func @_mm_bn_kernel(%arg0: i32, %arg1: i32, %arg2: i32, %arg3: memref<512x128xbf16, #tpu.memory_space<vmem>>, %arg4: memref<128x128xbf16, #tpu.memory_space<vmem>>, %arg5: memref<1x128xf32, #tpu.memory_space<vmem>>, %arg6: memref<1x128xf32, #tpu.memory_space<vmem>>, %arg7: memref<512x128xbf16, #tpu.memory_space<vmem>>, %arg8: memref<512x128xf32, #tpu.memory_space<vmem>>) attributes {dimension_semantics = [#tpu.dimension_semantics<parallel>, #tpu.dimension_semantics<parallel>, #tpu.dimension_semantics<arbitrary>], iteration_bounds = array<i64: 4, 1, 1>, scalar_prefetch = 0 : i64, scratch_operands = 1 : i64, tpu.core_type = #tpu.core_type<tc>, window_params = [{transform_indices = @transform_0, window_bounds = array<i64: 512, 128>}, {transform_indices = @transform_1, window_bounds = array<i64: 128, 128>}, {transform_indices = @transform_2, window_bounds = array<i64: 1, 128>}, {transform_indices = @transform_3, window_bounds = array<i64: 1, 128>}, {transform_indices = @transform_4, window_bounds = array<i64: 512, 128>}]} {
    %c0_i32 = arith.constant 0 : i32
    %0 = arith.cmpi eq, %arg2, %c0_i32 : i32
    %1 = arith.extui %0 : i1 to i32
    %c0_i32_0 = arith.constant 0 : i32
    %2 = arith.cmpi ne, %1, %c0_i32_0 : i32
    scf.if %2 {
      %cst_10 = arith.constant 0.000000e+00 : f32
      %12 = vector.broadcast %cst_10 : f32 to vector<512x128xf32>
      %c0_11 = arith.constant 0 : index
      %c0_12 = arith.constant 0 : index
      %13 = vector.load %arg8[%c0_11, %c0_12] : memref<512x128xf32, #tpu.memory_space<vmem>>, vector<512x128xf32>
      tpu.vector_store %arg8[%c0_11, %c0_12], %12 {strides = array<i32>} : memref<512x128xf32, #tpu.memory_space<vmem>>, vector<512x128xf32>,
    } else {
    }
    %c0 = arith.constant 0 : index
    %c0_1 = arith.constant 0 : index
    %3 = vector.load %arg8[%c0, %c0_1] : memref<512x128xf32, #tpu.memory_space<vmem>>, vector<512x128xf32>
    %c0_2 = arith.constant 0 : index
    %c0_3 = arith.constant 0 : index
    %4 = vector.load %arg3[%c0_2, %c0_3] : memref<512x128xbf16, #tpu.memory_space<vmem>>, vector<512x128xbf16>
    %c0_4 = arith.constant 0 : index
    %c0_5 = arith.constant 0 : index
    %5 = vector.load %arg4[%c0_4, %c0_5] : memref<128x128xbf16, #tpu.memory_space<vmem>>, vector<128x128xbf16>
    %cst = arith.constant dense<0.000000e+00> : vector<512x128xf32>
    %6 = tpu.matmul %4, %5, %cst {dimension_numbers = #tpu.dot_dimension_numbers<[1], [0], [0], [1], [0, 0, 1, 1], [], []>} : vector<512x128xbf16>, vector<128x128xbf16>, vector<512x128xf32> -> vector<512x128xf32>
    %7 = arith.addf %3, %6 : vector<512x128xf32>
    %c0_6 = arith.constant 0 : index
    %c0_7 = arith.constant 0 : index
    %8 = vector.load %arg8[%c0_6, %c0_7] : memref<512x128xf32, #tpu.memory_space<vmem>>, vector<512x128xf32>
    tpu.vector_store %arg8[%c0_6, %c0_7], %7 {strides = array<i32>} : memref<512x128xf32, #tpu.memory_space<vmem>>, vector<512x128xf32>,
    %c0_i32_8 = arith.constant 0 : i32
    %9 = arith.cmpi eq, %arg2, %c0_i32_8 : i32
    %10 = arith.extui %9 : i1 to i32
    %c0_i32_9 = arith.constant 0 : i32
    %11 = arith.cmpi ne, %10, %c0_i32_9 : i32
    scf.if %11 {
      %c0_10 = arith.constant 0 : index
      %c0_11 = arith.constant 0 : index
      %12 = vector.load %arg8[%c0_10, %c0_11] : memref<512x128xf32, #tpu.memory_space<vmem>>, vector<512x128xf32>
      %c0_12 = arith.constant 0 : index
      %c0_13 = arith.constant 0 : index
      %13 = vector.load %arg5[%c0_12, %c0_13] : memref<1x128xf32, #tpu.memory_space<vmem>>, vector<1x128xf32>
      %14 = vector.broadcast %13 : vector<1x128xf32> to vector<512x128xf32>
      %15 = arith.mulf %12, %14 : vector<512x128xf32>
      %c0_14 = arith.constant 0 : index
      %c0_15 = arith.constant 0 : index
      %16 = vector.load %arg6[%c0_14, %c0_15] : memref<1x128xf32, #tpu.memory_space<vmem>>, vector<1x128xf32>
      %17 = vector.broadcast %16 : vector<1x128xf32> to vector<512x128xf32>
      %18 = arith.addf %15, %17 : vector<512x128xf32>
      %cst_16 = arith.constant 0.000000e+00 : f32
      %19 = vector.broadcast %cst_16 : f32 to vector<512x128xf32>
      %20 = arith.maximumf %18, %19 : vector<512x128xf32>
      %21 = arith.truncf %20 : vector<512x128xf32> to vector<512x128xbf16>
      %c0_17 = arith.constant 0 : index
      %c0_18 = arith.constant 0 : index
      %22 = vector.load %arg7[%c0_17, %c0_18] : memref<512x128xbf16, #tpu.memory_space<vmem>>, vector<512x128xbf16>
      tpu.vector_store %arg7[%c0_17, %c0_18], %21 {strides = array<i32>} : memref<512x128xbf16, #tpu.memory_space<vmem>>, vector<512x128xbf16>,
    } else {
    }
    return
  }
  func.func @transform_0(%arg0: i32, %arg1: i32, %arg2: i32) -> (i32, i32) {
    %c0_i32 = arith.constant 0 : i32
    return %arg0, %arg2 : i32, i32
  }
  func.func @transform_1(%arg0: i32, %arg1: i32, %arg2: i32) -> (i32, i32) {
    %c0_i32 = arith.constant 0 : i32
    return %arg2, %arg1 : i32, i32
  }
  func.func @transform_2(%arg0: i32, %arg1: i32, %arg2: i32) -> (i32, i32) {
    %c0_i32 = arith.constant 0 : i32
    %c0_i32_0 = arith.constant 0 : i32
    return %c0_i32, %arg1 : i32, i32
  }
  func.func @transform_3(%arg0: i32, %arg1: i32, %arg2: i32) -> (i32, i32) {
    %c0_i32 = arith.constant 0 : i32
    %c0_i32_0 = arith.constant 0 : i32
    return %c0_i32, %arg1 : i32, i32
  }
  func.func @transform_4(%arg0: i32, %arg1: i32, %arg2: i32) -> (i32, i32) {
    %c0_i32 = arith.constant 0 : i32
    return %arg0, %arg1 : i32, i32
  }
}

</mosaic_0001>

<bundles_post_ra>
// kernel: tpu_custom_call.1
= control target key start
LH: loop header
LB: loop body
LE: loop exit
PB: predicated region body
PF: predicated region fallthrough
CT: control target
= control target key end

     0   :  { %s2645_s0 = inlined_call_operand.hbm [shape: bf16[2048,128], index: 0, kind: input, shape index: {}]   ;;  %s2646_s1 = inlined_call_operand.hbm [shape: bf16[128,128], index: 1, kind: input, shape index: {}]   ;;  %s2647_s2 = inlined_call_operand.vmem [shape: f32[1,128], index: 2, kind: input, shape index: {}]   ;;  %s2648_s3 = inlined_call_operand.vmem [shape: f32[1,128], index: 3, kind: input, shape index: {}]   ;;  %s2649_s4 = inlined_call_operand.hbm [shape: bf16[2048,128], index: 4, kind: output, shape index: {}]  }
   0x1   :  { %2653 = sst [smem:[#allocation13_spill]] %s2646_s1 }
   0x2   :  { %9 = vsyncpa [#allocation4], 0 }
   0x3   :  { %11 = vsyncpa [#allocation4 + $0x1], 0 }
   0x4   :  { %12 = vsyncpa [#allocation7], 0 }
   0x5   :  { %13 = vsyncpa [#allocation5], 0 }
   0x6   :  { %15 = vsyncpa [#allocation5 + $0x1], 0  ;;  %s2281_s15 = smov 0   ;;  %s2283_s16 = smov 0  }
   0x7   :  { %s2285_s17 = smov 0   ;;  %s2287_s18 = smov 0  }
   0x8   :  { %s2289_s19 = smov 0   ;;  %s2291_s20 = smov 0  }
   0x9 LB: > { %s1588_s21 = sadd.s32 4294967295, %s2249_s20   ;;  %s1589_s22 = sadd.s32 4294967294, %s2249_s20   ;;  %s2249_s20 = sphi %s2291_s20, %s21_s20   ;;  %s2245_s19 = sphi %s2289_s19, %s2670_s19   ;;  %s2241_s18 = sphi %s2287_s18, %s2669_s18   ;;  %s2237_s17 = sphi %s2285_s17, %s2668_s17   ;;  %s2233_s16 = sphi %s2283_s16, %s2667_s16   ;;  %s2229_s15 = sphi %s2281_s15, %s2666_s15  }
   0xa   : > { %p62_p0 = scmp.ne.s32.totalorder %s2233_s16, %s2229_s15  ;;  %p2315_p1 = scmp.eq.s32.totalorder %s1588_s21, 0 }
   0xb   : > { %p2319_p2 = scmp.eq.s32.totalorder %s1588_s21, 3  ;;  %p174_p3 = scmp.eq.s32.totalorder %s1589_s22, 3 }
   0xc   : > { %p2325_p4 = por %p2315_p1, %p62_p0  ;;  %p1590_p5 = scmp.ge.s32.totalorder %s2249_s20, 1 }
   0xd   : > { %p2330_p6 = por %p174_p3, %p62_p0  ;;  %p181_p7 = scmp.lt.s32.totalorder %s2249_s20, 5 }
   0xe   : > { %s2658_s1 = sld [smem:[#allocation13_spill]]  ;;  %s2251_s5 = smov [#allocation6]  }
   0xf   : > { %p2338_p8 = pnand %p1590_p5, %p181_p7  ;;  %s198_s6 = sshll.u32 %s2251_s5, 4  ;;  %s199_s6 = int_to_ptr.vmem [resolvable:$true] %s198_s6 }
  0x10   : > { %s2650_s7 = smov 64   ;;  %s2651_s8 = smov 4  }
  0x11   : > { %p2032_p9 = pneg %p2338_p8  ;;  %s40_s9 = sadd.s32 1, %s2245_s19 }
  0x12   : > { %p42_p11 = scmp.ge.s32.totalorder %s40_s9, 4  ;;  %s49_s10 = sadd.s32 1, %s2237_s17 }
  0x13   : > { %p2033_p10 = pnand %p2032_p9, %p2315_p1  ;;  %p56_p12 = scmp.ne.s32.totalorder %s2237_s17, %s2233_s16 }
  0x14   : > { %s196_s29 = sshll.u32 %s2658_s1, 4  ;;  %p57_p13 = scmp.eq.s32.totalorder %s2249_s20, 0  ;;  %s197_s29 = int_to_ptr.hbm [resolvable:$true] %s196_s29 }
  0x15   : > { %2035 = dma.hbm_to_vmem [thread:$0]  (!%p2033_p10), %s197_s29, 1024, %s199_s6, [#allocation7], %s2650_s7, %s2650_s7, %s2651_s8  }
  0x16   : > { %s2672_s9 = smov (%p42_p11, %s40_s9), 0  ;;  %p2356_p0 = por %p57_p13, %p56_p12 }
  0x17   : > { %2660 = sst [smem:[#allocation12_spill]] %s2672_s9  ;;  %p2362_p3 = por %p2319_p2, %p56_p12 }
  0x18   : > { %s44_s13 = ssub.s32 %s2245_s19, %s2672_s9  ;;  %p2045_p5 = scmp.lt.s32.totalorder %s2249_s20, 4 }
  0x19   : > { %p47_p7 = scmp.eq.s32.totalorder %s44_s13, 0  ;;  %s224_s14 = sand.u32 1, %s2237_s17  }
  0x1a   : > { %s1595_s21 = sshll.u32 %s224_s14, 8  ;;  %s1767_s27 = sshll.u32 %s2245_s19, 8 }
  0x1b   : > { %s2371_s22 = scalar_select %p47_p7, %s2237_s17, %s49_s10  }
  0x1c   : > { %s234_s5 = scalar_lea.hbm %s2645_s0, %s1767_s27  ;;  %s228_s6 = scalar_lea.vmem [#allocation3], %s1595_s21 }
  0x1d   : > { %s237_s7 = sshll.u32 %s228_s6, 4  ;;  %s235_s24 = sshll.u32 %s234_s5, 4  ;;  %s238_s7 = int_to_ptr.vmem [resolvable:$true] %s237_s7  ;;  %s236_s24 = int_to_ptr.hbm [resolvable:$true] %s235_s24 }
  0x1e   : > { %p2037_p2 = pnand %p2045_p5, %p2356_p0  ;;  %s225_s8 = scalar_lea.sflag [#allocation4], %s224_s14 }
  0x1f   : > { %s2663_s1 = smov 4   ;;  %s2664_s9 = smov 64  }
  0x20   : > { %2039 = dma.hbm_to_vmem [thread:$0]  (!%p2037_p2), %s236_s24, 4096, %s238_s7, %s225_s8, %s2664_s9, %s2664_s9, %s2663_s1  }
  0x21   : > { %249 = sbr.rel (%p2338_p8) target bundleno = 339 (0x153), region = 36  ;;  %s2385_s10 = sand.u32 (!%p2338_p8), 1, %s2233_s16  }
  0x22   : > { %s1599_s13 = sshll.u32 (!%p2338_p8), %s2385_s10, 8  ;;  %s252_s21 = scalar_lea.sflag (!%p2338_p8), [#allocation4], %s2385_s10 }
  0x23   : > { %s2391_s11 = scalar_lea.vmem (!%p2338_p8), [#allocation3], %s1599_s13 }
  0x26   : > { %2216 = dma.done.wait (%p2325_p4), %s252_s21, 4096  }
  0x27   : > { %2218 = vsyncadd (%p2325_p4), %s252_s21, 4294963200 }
  0x28   : > { %2220 = dma.done.wait (%p2315_p1), [#allocation7], 1024  }
  0x29   : > { %2222 = vsyncadd (%p2315_p1), [#allocation7], 4294966272  ;;  %v1807_v0 = vld [vmem:[#allocation6 + $0x38] sm:$0xff]  ;;  %v1806_v1 = vld [vmem:[#allocation6 + $0x30] sm:$0xff]  ;;  %s2459_s7 = scalar_lea.vmem [#allocation8], %s1599_s13  ;;  %s1808_s8 = sshll.u32 %s2241_s18, 8 }
  0x2a   : > { %753 = vmatpush.bf16.msra.mxu0 %v1807_v0  ;;  %2000 = vmatpush.bf16.msra.mxu1 %v1807_v0  ;;  %v1805_v2 = vld [vmem:[#allocation6 + $0x28] sm:$0xff]  ;;  %v1804_v3 = vld [vmem:[#allocation6 + $0x20] sm:$0xff]  ;;  %v1803_v4 = vld [vmem:[#allocation6 + $0x18] sm:$0xff]  ;;  %s1458_s27 = scalar_lea.hbm %s2649_s4, %s1808_s8  ;;  %s1459_s18 = sshll.u32 %s2459_s7, 4  ;;  %s1460_s18 = int_to_ptr.vmem [resolvable:$true] %s1459_s18 }
  0x2b   : > { %2001 = vmatpush.bf16.msra.mxu2 %v1807_v0  ;;  %2002 = vmatpush.bf16.msra.mxu3 %v1807_v0  ;;  %v1802_v5 = vld [vmem:[#allocation6 + $0x10] sm:$0xff]  ;;  %v1801_v6 = vld [vmem:[#allocation6 + $0x8] sm:$0xff]  ;;  %v1800_v7 = vld [vmem:[#allocation6] sm:$0xff]  ;;  %s1461_s28 = sshll.u32 %s1458_s27, 4  ;;  %s1446_s29 = scalar_lea.sflag [#allocation5], %s2385_s10  ;;  %s1462_s28 = int_to_ptr.hbm [resolvable:$true] %s1461_s28 }
  0x2c   : > { %v1768_v8 = vld [vmem:[%s2391_s11] sm:$0xff]  ;;  %v1769_v12 = vld [vmem:[%s2391_s11 + $0x8] sm:$0xff]  ;;  %v1770_v16 = vld [vmem:[%s2391_s11 + $0x10] sm:$0xff]  ;;  %s2177_s5 = sshra.s32 %s1462_s28, 4  ;;  %s2183_s21 = scalar_lea.hbm %s2649_s4, 1024  ;;  %s2178_s5 = int_to_ptr.hbm [resolvable:$true] %s2177_s5 }
  0x2d   : > { %v1776_v9 = vld [vmem:[%s2391_s11 + $0x40] sm:$0xff]  ;;  %v1777_v13 = vld [vmem:[%s2391_s11 + $0x48] sm:$0xff]  ;;  %v1778_v17 = vld [vmem:[%s2391_s11 + $0x50] sm:$0xff]  ;;  %s2179_s6 = scalar_lea.hbm %s2178_s5, 256  ;;  %p2184_p9 = scmp.lt.s32.totalorder %s2178_s5, %s2649_s4 }
  0x2e   : > { %754 = vmatpush.bf16.msra.mxu0 %v1806_v1  ;;  %2003 = vmatpush.bf16.msra.mxu1 %v1806_v1  ;;  %v1784_v10 = vld [vmem:[%s2391_s11 + $0x80] sm:$0xff]  ;;  %v1785_v14 = vld [vmem:[%s2391_s11 + $0x88] sm:$0xff]  ;;  %v1786_v18 = vld [vmem:[%s2391_s11 + $0x90] sm:$0xff]  ;;  %p2180_p1 = scmp.ne.s32.totalorder %s2178_s5, %s2179_s6  ;;  %p2185_p10 = scmp.lt.s32.totalorder %s2183_s21, %s2179_s6 }
  0x2f   : > { %2004 = vmatpush.bf16.msra.mxu2 %v1806_v1  ;;  %2005 = vmatpush.bf16.msra.mxu3 %v1806_v1  ;;  %v1792_v11 = vld [vmem:[%s2391_s11 + $0xc0] sm:$0xff]  ;;  %v1793_v15 = vld [vmem:[%s2391_s11 + $0xc8] sm:$0xff]  ;;  %v1794_v19 = vld [vmem:[%s2391_s11 + $0xd0] sm:$0xff] }
  0x30   : > { %v1771_v20 = vld [vmem:[%s2391_s11 + $0x18] sm:$0xff]  ;;  %v1772_v24 = vld [vmem:[%s2391_s11 + $0x20] sm:$0xff]  ;;  %v1773_v28 = vld [vmem:[%s2391_s11 + $0x28] sm:$0xff]  ;;  %p2181_p4 = pnand %p2180_p1, %p2362_p3  ;;  %p2186_p11 = por %p2185_p10, %p2184_p9 }
  0x31   : > { %v1779_v21 = vld [vmem:[%s2391_s11 + $0x58] sm:$0xff]  ;;  %v1780_v25 = vld [vmem:[%s2391_s11 + $0x60] sm:$0xff]  ;;  %v1781_v29 = vld [vmem:[%s2391_s11 + $0x68] sm:$0xff] }
  0x32   : > { %755 = vmatpush.bf16.msra.mxu0 %v1805_v2  ;;  %2006 = vmatpush.bf16.msra.mxu1 %v1805_v2  ;;  %v1787_v22 = vld [vmem:[%s2391_s11 + $0x98] sm:$0xff]  ;;  %v1788_v26 = vld [vmem:[%s2391_s11 + $0xa0] sm:$0xff]  ;;  %v1789_v30 = vld [vmem:[%s2391_s11 + $0xa8] sm:$0xff]  ;;  %p2182_p8 = pneg %p2181_p4 }
  0x33   : > { %2007 = vmatpush.bf16.msra.mxu2 %v1805_v2  ;;  %2008 = vmatpush.bf16.msra.mxu3 %v1805_v2  ;;  %v1795_v23 = vld [vmem:[%s2391_s11 + $0xd8] sm:$0xff]  ;;  %v1796_v27 = vld [vmem:[%s2391_s11 + $0xe0] sm:$0xff]  ;;  %v1797_v31 = vld [vmem:[%s2391_s11 + $0xe8] sm:$0xff] }
  0x34   : > { %v1774_v32 = vld [vmem:[%s2391_s11 + $0x30] sm:$0xff]  ;;  %v1775_v36 = vld [vmem:[%s2391_s11 + $0x38] sm:$0xff]  ;;  %v2436_v42 = vld [vmem:[%s2647_s2] ss:$0 sm:$0xff]  ;;  %p2187_p12 = pnand %p2186_p11, %p2182_p8 }
  0x35   : > { %v1782_v33 = vld [vmem:[%s2391_s11 + $0x70] sm:$0xff]  ;;  %v1783_v37 = vld [vmem:[%s2391_s11 + $0x78] sm:$0xff]  ;;  %v2442_v44 = vld [vmem:[%s2648_s3] ss:$0 sm:$0xff] }
  0x36   : > { %756 = vmatpush.bf16.msra.mxu0 %v1804_v3  ;;  %2009 = vmatpush.bf16.msra.mxu1 %v1804_v3  ;;  %v1790_v34 = vld [vmem:[%s2391_s11 + $0xb0] sm:$0xff]  ;;  %v1791_v38 = vld [vmem:[%s2391_s11 + $0xb8] sm:$0xff] }
  0x37   : > { %2010 = vmatpush.bf16.msra.mxu2 %v1804_v3  ;;  %2011 = vmatpush.bf16.msra.mxu3 %v1804_v3  ;;  %v1798_v35 = vld [vmem:[%s2391_s11 + $0xf0] sm:$0xff]  ;;  %v1799_v39 = vld [vmem:[%s2391_s11 + $0xf8] sm:$0xff] }
  0x3a   : > { %757 = vmatpush.bf16.msra.mxu0 %v1803_v4  ;;  %2012 = vmatpush.bf16.msra.mxu1 %v1803_v4 }
  0x3b   : > { %2013 = vmatpush.bf16.msra.mxu2 %v1803_v4  ;;  %2014 = vmatpush.bf16.msra.mxu3 %v1803_v4 }
  0x3e   : > { %758 = vmatpush.bf16.msra.mxu0 %v1802_v5  ;;  %2015 = vmatpush.bf16.msra.mxu1 %v1802_v5 }
  0x3f   : > { %2016 = vmatpush.bf16.msra.mxu2 %v1802_v5  ;;  %2017 = vmatpush.bf16.msra.mxu3 %v1802_v5 }
  0x42   : > { %759 = vmatpush.bf16.msra.mxu0 %v1801_v6  ;;  %2018 = vmatpush.bf16.msra.mxu1 %v1801_v6 }
  0x43   : > { %2019 = vmatpush.bf16.msra.mxu2 %v1801_v6  ;;  %2020 = vmatpush.bf16.msra.mxu3 %v1801_v6 }
  0x46   : > { %760 = vmatpush.bf16.msra.mxu0 %v1800_v7  ;;  %2021 = vmatpush.bf16.msra.mxu1 %v1800_v7 }
  0x47   : > { %2022 = vmatpush.bf16.msra.mxu2 %v1800_v7  ;;  %2023 = vmatpush.bf16.msra.mxu3 %v1800_v7 }
  0x49   : > { %761 = vmatmul.bf16.vlgmr.msra.gmra.mxu0 %v1768_v8  ;;  %801 = vmatmul.bf16.vlgmr.msra.gmra.mxu1 %v1776_v9 }
  0x4a   : > { %841 = vmatmul.bf16.vlgmr.msra.gmra.mxu2 %v1784_v10  ;;  %881 = vmatmul.bf16.vlgmr.msra.gmra.mxu3 %v1792_v11 }
  0x59   : > { %766 = vmatmul.bf16.gmra.mxu0 %v1769_v12  ;;  %806 = vmatmul.bf16.gmra.mxu1 %v1777_v13 }
  0x5a   : > { %846 = vmatmul.bf16.gmra.mxu2 %v1785_v14  ;;  %886 = vmatmul.bf16.gmra.mxu3 %v1793_v15 }
  0x69   : > { %771 = vmatmul.bf16.gmra.mxu0 %v1770_v16  ;;  %811 = vmatmul.bf16.gmra.mxu1 %v1778_v17 }
  0x6a   : > { %851 = vmatmul.bf16.gmra.mxu2 %v1786_v18  ;;  %891 = vmatmul.bf16.gmra.mxu3 %v1794_v19 }
  0x79   : > { %776 = vmatmul.bf16.gmra.mxu0 %v1771_v20  ;;  %816 = vmatmul.bf16.gmra.mxu1 %v1779_v21 }
  0x7a   : > { %856 = vmatmul.bf16.gmra.mxu2 %v1787_v22  ;;  %896 = vmatmul.bf16.gmra.mxu3 %v1795_v23 }
  0x89   : > { %781 = vmatmul.bf16.gmra.mxu0 %v1772_v24  ;;  %821 = vmatmul.bf16.gmra.mxu1 %v1780_v25 }
  0x8a   : > { %861 = vmatmul.bf16.gmra.mxu2 %v1788_v26  ;;  %901 = vmatmul.bf16.gmra.mxu3 %v1796_v27 }
  0x99   : > { %786 = vmatmul.bf16.gmra.mxu0 %v1773_v28  ;;  %826 = vmatmul.bf16.gmra.mxu1 %v1781_v29 }
  0x9a   : > { %866 = vmatmul.bf16.gmra.mxu2 %v1789_v30  ;;  %906 = vmatmul.bf16.gmra.mxu3 %v1797_v31 }
  0xa9   : > { %791 = vmatmul.bf16.gmra.mxu0 %v1774_v32  ;;  %831 = vmatmul.bf16.gmra.mxu1 %v1782_v33 }
  0xaa   : > { %871 = vmatmul.bf16.gmra.mxu2 %v1790_v34  ;;  %911 = vmatmul.bf16.gmra.mxu3 %v1798_v35 }
  0xb9   : > { %796 = vmatmul.bf16.gmra.mxu0 %v1775_v36  ;;  %836 = vmatmul.bf16.gmra.mxu1 %v1783_v37 }
  0xba   : > { %876 = vmatmul.bf16.gmra.mxu2 %v1791_v38  ;;  %916 = vmatmul.bf16.gmra.mxu3 %v1799_v39 }
  0xc6   : > { %v762_v40 = vpop.f32.mrf.mxu0  ;;  %v802_v41 = vpop.f32.mrf.mxu1 }
  0xc7   : > { %v1121_v43 = vmul.f32 %v2436_v42, %v762_v40  ;;  %v1137_v45 = vmul.f32 %v2436_v42, %v802_v41 }
  0xc9   : > { %v1189_v50 = vadd.f32 %v2442_v44, %v1121_v43  ;;  %v1205_v51 = vadd.f32 %v2442_v44, %v1137_v45 }
  0xcb   : > { %v1253_v58 = vmax.f32 %v1189_v50, 0.0  ;;  %v1269_v59 = vmax.f32 %v1205_v51, 0.0 }
  0xcd   : > { %v842_v46 = vpop.f32.mrf.mxu2  ;;  %v882_v47 = vpop.f32.mrf.mxu3 }
  0xce   : > { %v764_v48 = vpop.f32.mrf.mxu0  ;;  %v804_v49 = vpop.f32.mrf.mxu1  ;;  %v1153_v56 = vmul.f32 %v2436_v42, %v842_v46  ;;  %v1169_v57 = vmul.f32 %v2436_v42, %v882_v47 }
  0xcf   : > { %v1122_v52 = vmul.f32 %v2436_v42, %v764_v48  ;;  %v1138_v53 = vmul.f32 %v2436_v42, %v804_v49 }
  0xd0   : > { %v1221_v2 = vadd.f32 %v2442_v44, %v1153_v56  ;;  %v1237_v3 = vadd.f32 %v2442_v44, %v1169_v57 }
  0xd1   : > { %v1190_v54 = vadd.f32 %v2442_v44, %v1122_v52  ;;  %v1206_v55 = vadd.f32 %v2442_v44, %v1138_v53 }
  0xd2   : > { %v1285_v10 = vmax.f32 %v1221_v2, 0.0  ;;  %v1301_v11 = vmax.f32 %v1237_v3, 0.0 }
  0xd3   : > { %v1254_v60 = vmax.f32 %v1190_v54, 0.0  ;;  %v1270_v61 = vmax.f32 %v1206_v55, 0.0 }
  0xd5   : > { %v1812_v62 = vpack.c.bf16 %v1254_v60, %v1253_v58  ;;  %v1852_v63 = vpack.c.bf16 %v1270_v61, %v1269_v59  ;;  %v844_v0 = vpop.f32.mrf.mxu2  ;;  %v884_v1 = vpop.f32.mrf.mxu3 }
  0xd6   : > { %v1154_v4 = vmul.f32 %v2436_v42, %v844_v0  ;;  %v1170_v5 = vmul.f32 %v2436_v42, %v884_v1  ;;  %v767_v6 = vpop.f32.mrf.mxu0  ;;  %v807_v7 = vpop.f32.mrf.mxu1 }
  0xd7   : > { %1813 = vst [vmem:[%s2459_s7] sm:$0xff] %v1812_v62   ;;  %v1123_v14 = vmul.f32 %v2436_v42, %v767_v6  ;;  %v1139_v15 = vmul.f32 %v2436_v42, %v807_v7 }
  0xd8   : > { %1976 = vst [vmem:[%s2459_s7 + $0x40] sm:$0xff] %v1852_v63   ;;  %v1222_v8 = vadd.f32 %v2442_v44, %v1154_v4  ;;  %v1238_v9 = vadd.f32 %v2442_v44, %v1170_v5 }
  0xd9   : > { %v1191_v22 = vadd.f32 %v2442_v44, %v1123_v14  ;;  %v1207_v23 = vadd.f32 %v2442_v44, %v1139_v15 }
  0xda   : > { %v1286_v12 = vmax.f32 %v1222_v8, 0.0  ;;  %v1302_v13 = vmax.f32 %v1238_v9, 0.0 }
  0xdb   : > { %v1255_v30 = vmax.f32 %v1191_v22, 0.0  ;;  %v1271_v31 = vmax.f32 %v1207_v23, 0.0 }
  0xdc   : > { %v1892_v16 = vpack.c.bf16 %v1286_v12, %v1285_v10  ;;  %v1932_v17 = vpack.c.bf16 %v1302_v13, %v1301_v11 }
  0xdd   : > { %v847_v18 = vpop.f32.mrf.mxu2  ;;  %v887_v19 = vpop.f32.mrf.mxu3 }
  0xde   : > { %1984 = vst [vmem:[%s2459_s7 + $0x80] sm:$0xff] %v1892_v16   ;;  %v769_v20 = vpop.f32.mrf.mxu0  ;;  %v809_v21 = vpop.f32.mrf.mxu1  ;;  %v1155_v28 = vmul.f32 %v2436_v42, %v847_v18  ;;  %v1171_v29 = vmul.f32 %v2436_v42, %v887_v19 }
  0xdf   : > { %1992 = vst [vmem:[%s2459_s7 + $0xc0] sm:$0xff] %v1932_v17   ;;  %v1124_v24 = vmul.f32 %v2436_v42, %v769_v20  ;;  %v1140_v25 = vmul.f32 %v2436_v42, %v809_v21 }
  0xe0   : > { %v1223_v38 = vadd.f32 %v2442_v44, %v1155_v28  ;;  %v1239_v39 = vadd.f32 %v2442_v44, %v1171_v29 }
  0xe1   : > { %v1192_v26 = vadd.f32 %v2442_v44, %v1124_v24  ;;  %v1208_v27 = vadd.f32 %v2442_v44, %v1140_v25 }
  0xe2   : > { %v1287_v48 = vmax.f32 %v1223_v38, 0.0  ;;  %v1303_v49 = vmax.f32 %v1239_v39, 0.0 }
  0xe3   : > { %v1256_v32 = vmax.f32 %v1192_v26, 0.0  ;;  %v1272_v33 = vmax.f32 %v1208_v27, 0.0 }
  0xe5   : > { %v1817_v34 = vpack.c.bf16 %v1256_v32, %v1255_v30  ;;  %v1857_v35 = vpack.c.bf16 %v1272_v33, %v1271_v31  ;;  %v849_v36 = vpop.f32.mrf.mxu2  ;;  %v889_v37 = vpop.f32.mrf.mxu3 }
  0xe6   : > { %v1156_v40 = vmul.f32 %v2436_v42, %v849_v36  ;;  %v1172_v41 = vmul.f32 %v2436_v42, %v889_v37  ;;  %v772_v43 = vpop.f32.mrf.mxu0  ;;  %v812_v45 = vpop.f32.mrf.mxu1 }
  0xe7   : > { %1969 = vst [vmem:[%s2459_s7 + $0x8] sm:$0xff] %v1817_v34   ;;  %v1125_v52 = vmul.f32 %v2436_v42, %v772_v43  ;;  %v1141_v53 = vmul.f32 %v2436_v42, %v812_v45 }
  0xe8   : > { %1977 = vst [vmem:[%s2459_s7 + $0x48] sm:$0xff] %v1857_v35   ;;  %v1224_v46 = vadd.f32 %v2442_v44, %v1156_v40  ;;  %v1240_v47 = vadd.f32 %v2442_v44, %v1172_v41 }
  0xe9   : > { %v1193_v60 = vadd.f32 %v2442_v44, %v1125_v52  ;;  %v1209_v61 = vadd.f32 %v2442_v44, %v1141_v53 }
  0xea   : > { %v1288_v50 = vmax.f32 %v1224_v46, 0.0  ;;  %v1304_v51 = vmax.f32 %v1240_v47, 0.0 }
  0xeb   : > { %v1257_v4 = vmax.f32 %v1193_v60, 0.0  ;;  %v1273_v5 = vmax.f32 %v1209_v61, 0.0 }
  0xec   : > { %v1897_v54 = vpack.c.bf16 %v1288_v50, %v1287_v48  ;;  %v1937_v55 = vpack.c.bf16 %v1304_v51, %v1303_v49 }
  0xed   : > { %v852_v56 = vpop.f32.mrf.mxu2  ;;  %v892_v57 = vpop.f32.mrf.mxu3 }
  0xee   : > { %1985 = vst [vmem:[%s2459_s7 + $0x88] sm:$0xff] %v1897_v54   ;;  %v774_v58 = vpop.f32.mrf.mxu0  ;;  %v814_v59 = vpop.f32.mrf.mxu1  ;;  %v1157_v2 = vmul.f32 %v2436_v42, %v852_v56  ;;  %v1173_v3 = vmul.f32 %v2436_v42, %v892_v57 }
  0xef   : > { %1993 = vst [vmem:[%s2459_s7 + $0xc8] sm:$0xff] %v1937_v55   ;;  %v1126_v62 = vmul.f32 %v2436_v42, %v774_v58  ;;  %v1142_v63 = vmul.f32 %v2436_v42, %v814_v59 }
  0xf0   : > { %v1225_v12 = vadd.f32 %v2442_v44, %v1157_v2  ;;  %v1241_v13 = vadd.f32 %v2442_v44, %v1173_v3 }
  0xf1   : > { %v1194_v0 = vadd.f32 %v2442_v44, %v1126_v62  ;;  %v1210_v1 = vadd.f32 %v2442_v44, %v1142_v63 }
  0xf2   : > { %v1289_v20 = vmax.f32 %v1225_v12, 0.0  ;;  %v1305_v21 = vmax.f32 %v1241_v13, 0.0 }
  0xf3   : > { %v1258_v6 = vmax.f32 %v1194_v0, 0.0  ;;  %v1274_v7 = vmax.f32 %v1210_v1, 0.0 }
  0xf5   : > { %v1822_v8 = vpack.c.bf16 %v1258_v6, %v1257_v4  ;;  %v1862_v9 = vpack.c.bf16 %v1274_v7, %v1273_v5  ;;  %v854_v10 = vpop.f32.mrf.mxu2  ;;  %v894_v11 = vpop.f32.mrf.mxu3 }
  0xf6   : > { %v1158_v14 = vmul.f32 %v2436_v42, %v854_v10  ;;  %v1174_v15 = vmul.f32 %v2436_v42, %v894_v11  ;;  %v777_v16 = vpop.f32.mrf.mxu0  ;;  %v817_v17 = vpop.f32.mrf.mxu1 }
  0xf7   : > { %1970 = vst [vmem:[%s2459_s7 + $0x10] sm:$0xff] %v1822_v8   ;;  %v1127_v24 = vmul.f32 %v2436_v42, %v777_v16  ;;  %v1143_v25 = vmul.f32 %v2436_v42, %v817_v17 }
  0xf8   : > { %1978 = vst [vmem:[%s2459_s7 + $0x50] sm:$0xff] %v1862_v9   ;;  %v1226_v18 = vadd.f32 %v2442_v44, %v1158_v14  ;;  %v1242_v19 = vadd.f32 %v2442_v44, %v1174_v15 }
  0xf9   : > { %v1195_v32 = vadd.f32 %v2442_v44, %v1127_v24  ;;  %v1211_v33 = vadd.f32 %v2442_v44, %v1143_v25 }
  0xfa   : > { %v1290_v22 = vmax.f32 %v1226_v18, 0.0  ;;  %v1306_v23 = vmax.f32 %v1242_v19, 0.0 }
  0xfb   : > { %v1259_v40 = vmax.f32 %v1195_v32, 0.0  ;;  %v1275_v41 = vmax.f32 %v1211_v33, 0.0 }
  0xfc   : > { %v1902_v26 = vpack.c.bf16 %v1290_v22, %v1289_v20  ;;  %v1942_v27 = vpack.c.bf16 %v1306_v23, %v1305_v21 }
  0xfd   : > { %v857_v28 = vpop.f32.mrf.mxu2  ;;  %v897_v29 = vpop.f32.mrf.mxu3 }
  0xfe   : > { %1986 = vst [vmem:[%s2459_s7 + $0x90] sm:$0xff] %v1902_v26   ;;  %v779_v30 = vpop.f32.mrf.mxu0  ;;  %v819_v31 = vpop.f32.mrf.mxu1  ;;  %v1159_v38 = vmul.f32 %v2436_v42, %v857_v28  ;;  %v1175_v39 = vmul.f32 %v2436_v42, %v897_v29 }
  0xff   : > { %1994 = vst [vmem:[%s2459_s7 + $0xd0] sm:$0xff] %v1942_v27   ;;  %v1128_v34 = vmul.f32 %v2436_v42, %v779_v30  ;;  %v1144_v35 = vmul.f32 %v2436_v42, %v819_v31 }
 0x100   : > { %v1227_v50 = vadd.f32 %v2442_v44, %v1159_v38  ;;  %v1243_v51 = vadd.f32 %v2442_v44, %v1175_v39 }
 0x101   : > { %v1196_v36 = vadd.f32 %v2442_v44, %v1128_v34  ;;  %v1212_v37 = vadd.f32 %v2442_v44, %v1144_v35 }
 0x102   : > { %v1291_v58 = vmax.f32 %v1227_v50, 0.0  ;;  %v1307_v59 = vmax.f32 %v1243_v51, 0.0 }
 0x103   : > { %v1260_v43 = vmax.f32 %v1196_v36, 0.0  ;;  %v1276_v45 = vmax.f32 %v1212_v37, 0.0 }
 0x105   : > { %v1827_v46 = vpack.c.bf16 %v1260_v43, %v1259_v40  ;;  %v1867_v47 = vpack.c.bf16 %v1276_v45, %v1275_v41  ;;  %v859_v48 = vpop.f32.mrf.mxu2  ;;  %v899_v49 = vpop.f32.mrf.mxu3 }
 0x106   : > { %v1160_v52 = vmul.f32 %v2436_v42, %v859_v48  ;;  %v1176_v53 = vmul.f32 %v2436_v42, %v899_v49  ;;  %v782_v54 = vpop.f32.mrf.mxu0  ;;  %v822_v55 = vpop.f32.mrf.mxu1 }
 0x107   : > { %1971 = vst [vmem:[%s2459_s7 + $0x18] sm:$0xff] %v1827_v46   ;;  %v1129_v62 = vmul.f32 %v2436_v42, %v782_v54  ;;  %v1145_v63 = vmul.f32 %v2436_v42, %v822_v55 }
 0x108   : > { %1979 = vst [vmem:[%s2459_s7 + $0x58] sm:$0xff] %v1867_v47   ;;  %v1228_v56 = vadd.f32 %v2442_v44, %v1160_v52  ;;  %v1244_v57 = vadd.f32 %v2442_v44, %v1176_v53 }
 0x109   : > { %v1197_v6 = vadd.f32 %v2442_v44, %v1129_v62  ;;  %v1213_v7 = vadd.f32 %v2442_v44, %v1145_v63 }
 0x10a   : > { %v1292_v60 = vmax.f32 %v1228_v56, 0.0  ;;  %v1308_v61 = vmax.f32 %v1244_v57, 0.0 }
 0x10b   : > { %v1261_v14 = vmax.f32 %v1197_v6, 0.0  ;;  %v1277_v15 = vmax.f32 %v1213_v7, 0.0 }
 0x10c   : > { %v1907_v0 = vpack.c.bf16 %v1292_v60, %v1291_v58  ;;  %v1947_v1 = vpack.c.bf16 %v1308_v61, %v1307_v59 }
 0x10d   : > { %v862_v2 = vpop.f32.mrf.mxu2  ;;  %v902_v3 = vpop.f32.mrf.mxu3 }
 0x10e   : > { %1987 = vst [vmem:[%s2459_s7 + $0x98] sm:$0xff] %v1907_v0   ;;  %v784_v4 = vpop.f32.mrf.mxu0  ;;  %v824_v5 = vpop.f32.mrf.mxu1  ;;  %v1161_v12 = vmul.f32 %v2436_v42, %v862_v2  ;;  %v1177_v13 = vmul.f32 %v2436_v42, %v902_v3 }
 0x10f   : > { %1995 = vst [vmem:[%s2459_s7 + $0xd8] sm:$0xff] %v1947_v1   ;;  %v1130_v8 = vmul.f32 %v2436_v42, %v784_v4  ;;  %v1146_v9 = vmul.f32 %v2436_v42, %v824_v5 }
 0x110   : > { %v1229_v22 = vadd.f32 %v2442_v44, %v1161_v12  ;;  %v1245_v23 = vadd.f32 %v2442_v44, %v1177_v13 }
 0x111   : > { %v1198_v10 = vadd.f32 %v2442_v44, %v1130_v8  ;;  %v1214_v11 = vadd.f32 %v2442_v44, %v1146_v9 }
 0x112   : > { %v1293_v30 = vmax.f32 %v1229_v22, 0.0  ;;  %v1309_v31 = vmax.f32 %v1245_v23, 0.0 }
 0x113   : > { %v1262_v16 = vmax.f32 %v1198_v10, 0.0  ;;  %v1278_v17 = vmax.f32 %v1214_v11, 0.0 }
 0x115   : > { %v1832_v18 = vpack.c.bf16 %v1262_v16, %v1261_v14  ;;  %v1872_v19 = vpack.c.bf16 %v1278_v17, %v1277_v15  ;;  %v864_v20 = vpop.f32.mrf.mxu2  ;;  %v904_v21 = vpop.f32.mrf.mxu3 }
 0x116   : > { %v1162_v24 = vmul.f32 %v2436_v42, %v864_v20  ;;  %v1178_v25 = vmul.f32 %v2436_v42, %v904_v21  ;;  %v787_v26 = vpop.f32.mrf.mxu0  ;;  %v827_v27 = vpop.f32.mrf.mxu1 }
 0x117   : > { %1972 = vst [vmem:[%s2459_s7 + $0x20] sm:$0xff] %v1832_v18   ;;  %v1131_v34 = vmul.f32 %v2436_v42, %v787_v26  ;;  %v1147_v35 = vmul.f32 %v2436_v42, %v827_v27 }
 0x118   : > { %1980 = vst [vmem:[%s2459_s7 + $0x60] sm:$0xff] %v1872_v19   ;;  %v1230_v28 = vadd.f32 %v2442_v44, %v1162_v24  ;;  %v1246_v29 = vadd.f32 %v2442_v44, %v1178_v25 }
 0x119   : > { %v1199_v43 = vadd.f32 %v2442_v44, %v1131_v34  ;;  %v1215_v45 = vadd.f32 %v2442_v44, %v1147_v35 }
 0x11a   : > { %v1294_v32 = vmax.f32 %v1230_v28, 0.0  ;;  %v1310_v33 = vmax.f32 %v1246_v29, 0.0 }
 0x11b   : > { %v1263_v52 = vmax.f32 %v1199_v43, 0.0  ;;  %v1279_v53 = vmax.f32 %v1215_v45, 0.0 }
 0x11c   : > { %v1912_v36 = vpack.c.bf16 %v1294_v32, %v1293_v30  ;;  %v1952_v37 = vpack.c.bf16 %v1310_v33, %v1309_v31 }
 0x11d   : > { %v867_v38 = vpop.f32.mrf.mxu2  ;;  %v907_v39 = vpop.f32.mrf.mxu3 }
 0x11e   : > { %1988 = vst [vmem:[%s2459_s7 + $0xa0] sm:$0xff] %v1912_v36   ;;  %v789_v40 = vpop.f32.mrf.mxu0  ;;  %v829_v41 = vpop.f32.mrf.mxu1  ;;  %v1163_v50 = vmul.f32 %v2436_v42, %v867_v38  ;;  %v1179_v51 = vmul.f32 %v2436_v42, %v907_v39 }
 0x11f   : > { %1996 = vst [vmem:[%s2459_s7 + $0xe0] sm:$0xff] %v1952_v37   ;;  %v1132_v46 = vmul.f32 %v2436_v42, %v789_v40  ;;  %v1148_v47 = vmul.f32 %v2436_v42, %v829_v41 }
 0x120   : > { %v1231_v60 = vadd.f32 %v2442_v44, %v1163_v50  ;;  %v1247_v61 = vadd.f32 %v2442_v44, %v1179_v51 }
 0x121   : > { %v1200_v48 = vadd.f32 %v2442_v44, %v1132_v46  ;;  %v1216_v49 = vadd.f32 %v2442_v44, %v1148_v47 }
 0x122   : > { %v1295_v4 = vmax.f32 %v1231_v60, 0.0  ;;  %v1311_v5 = vmax.f32 %v1247_v61, 0.0 }
 0x123   : > { %v1264_v54 = vmax.f32 %v1200_v48, 0.0  ;;  %v1280_v55 = vmax.f32 %v1216_v49, 0.0 }
 0x125   : > { %v1837_v56 = vpack.c.bf16 %v1264_v54, %v1263_v52  ;;  %v1877_v57 = vpack.c.bf16 %v1280_v55, %v1279_v53  ;;  %v869_v58 = vpop.f32.mrf.mxu2  ;;  %v909_v59 = vpop.f32.mrf.mxu3 }
 0x126   : > { %v1164_v62 = vmul.f32 %v2436_v42, %v869_v58  ;;  %v1180_v63 = vmul.f32 %v2436_v42, %v909_v59  ;;  %v792_v0 = vpop.f32.mrf.mxu0  ;;  %v832_v1 = vpop.f32.mrf.mxu1 }
 0x127   : > { %1973 = vst [vmem:[%s2459_s7 + $0x28] sm:$0xff] %v1837_v56   ;;  %v1133_v8 = vmul.f32 %v2436_v42, %v792_v0  ;;  %v1149_v9 = vmul.f32 %v2436_v42, %v832_v1 }
 0x128   : > { %1981 = vst [vmem:[%s2459_s7 + $0x68] sm:$0xff] %v1877_v57   ;;  %v1232_v2 = vadd.f32 %v2442_v44, %v1164_v62  ;;  %v1248_v3 = vadd.f32 %v2442_v44, %v1180_v63 }
 0x129   : > { %v1201_v16 = vadd.f32 %v2442_v44, %v1133_v8  ;;  %v1217_v17 = vadd.f32 %v2442_v44, %v1149_v9 }
 0x12a   : > { %v1296_v6 = vmax.f32 %v1232_v2, 0.0  ;;  %v1312_v7 = vmax.f32 %v1248_v3, 0.0 }
 0x12b   : > { %v1265_v24 = vmax.f32 %v1201_v16, 0.0  ;;  %v1281_v25 = vmax.f32 %v1217_v17, 0.0 }
 0x12c   : > { %v1917_v10 = vpack.c.bf16 %v1296_v6, %v1295_v4  ;;  %v1957_v11 = vpack.c.bf16 %v1312_v7, %v1311_v5 }
 0x12d   : > { %v872_v12 = vpop.f32.mrf.mxu2  ;;  %v912_v13 = vpop.f32.mrf.mxu3 }
 0x12e   : > { %1989 = vst [vmem:[%s2459_s7 + $0xa8] sm:$0xff] %v1917_v10   ;;  %v794_v14 = vpop.f32.mrf.mxu0  ;;  %v834_v15 = vpop.f32.mrf.mxu1  ;;  %v1165_v22 = vmul.f32 %v2436_v42, %v872_v12  ;;  %v1181_v23 = vmul.f32 %v2436_v42, %v912_v13 }
 0x12f   : > { %1997 = vst [vmem:[%s2459_s7 + $0xe8] sm:$0xff] %v1957_v11   ;;  %v1134_v18 = vmul.f32 %v2436_v42, %v794_v14  ;;  %v1150_v19 = vmul.f32 %v2436_v42, %v834_v15 }
 0x130   : > { %v1233_v32 = vadd.f32 %v2442_v44, %v1165_v22  ;;  %v1249_v33 = vadd.f32 %v2442_v44, %v1181_v23 }
 0x131   : > { %v1202_v20 = vadd.f32 %v2442_v44, %v1134_v18  ;;  %v1218_v21 = vadd.f32 %v2442_v44, %v1150_v19 }
 0x132   : > { %v1297_v40 = vmax.f32 %v1233_v32, 0.0  ;;  %v1313_v41 = vmax.f32 %v1249_v33, 0.0 }
 0x133   : > { %v1266_v26 = vmax.f32 %v1202_v20, 0.0  ;;  %v1282_v27 = vmax.f32 %v1218_v21, 0.0 }
 0x135   : > { %v1842_v28 = vpack.c.bf16 %v1266_v26, %v1265_v24  ;;  %v1882_v29 = vpack.c.bf16 %v1282_v27, %v1281_v25  ;;  %v874_v30 = vpop.f32.mrf.mxu2  ;;  %v914_v31 = vpop.f32.mrf.mxu3 }
 0x136   : > { %v1166_v34 = vmul.f32 %v2436_v42, %v874_v30  ;;  %v1182_v35 = vmul.f32 %v2436_v42, %v914_v31  ;;  %v797_v36 = vpop.f32.mrf.mxu0  ;;  %v837_v37 = vpop.f32.mrf.mxu1 }
 0x137   : > { %1974 = vst [vmem:[%s2459_s7 + $0x30] sm:$0xff] %v1842_v28   ;;  %v1135_v46 = vmul.f32 %v2436_v42, %v797_v36  ;;  %v1151_v47 = vmul.f32 %v2436_v42, %v837_v37 }
 0x138   : > { %1982 = vst [vmem:[%s2459_s7 + $0x70] sm:$0xff] %v1882_v29   ;;  %v1234_v38 = vadd.f32 %v2442_v44, %v1166_v34  ;;  %v1250_v39 = vadd.f32 %v2442_v44, %v1182_v35 }
 0x139   : > { %v1203_v54 = vadd.f32 %v2442_v44, %v1135_v46  ;;  %v1219_v55 = vadd.f32 %v2442_v44, %v1151_v47 }
 0x13a   : > { %v1298_v43 = vmax.f32 %v1234_v38, 0.0  ;;  %v1314_v45 = vmax.f32 %v1250_v39, 0.0 }
 0x13b   : > { %v1267_v62 = vmax.f32 %v1203_v54, 0.0  ;;  %v1283_v63 = vmax.f32 %v1219_v55, 0.0 }
 0x13c   : > { %v1922_v48 = vpack.c.bf16 %v1298_v43, %v1297_v40  ;;  %v1962_v49 = vpack.c.bf16 %v1314_v45, %v1313_v41 }
 0x13d   : > { %v877_v50 = vpop.f32.mrf.mxu2  ;;  %v917_v51 = vpop.f32.mrf.mxu3 }
 0x13e   : > { %1990 = vst [vmem:[%s2459_s7 + $0xb0] sm:$0xff] %v1922_v48   ;;  %v799_v52 = vpop.f32.mrf.mxu0  ;;  %v839_v53 = vpop.f32.mrf.mxu1  ;;  %v1167_v60 = vmul.f32 %v2436_v42, %v877_v50  ;;  %v1183_v61 = vmul.f32 %v2436_v42, %v917_v51 }
 0x13f   : > { %1998 = vst [vmem:[%s2459_s7 + $0xf0] sm:$0xff] %v1962_v49   ;;  %v1136_v56 = vmul.f32 %v2436_v42, %v799_v52  ;;  %v1152_v57 = vmul.f32 %v2436_v42, %v839_v53 }
 0x140   : > { %v1235_v6 = vadd.f32 %v2442_v44, %v1167_v60  ;;  %v1251_v7 = vadd.f32 %v2442_v44, %v1183_v61 }
 0x141   : > { %v1204_v58 = vadd.f32 %v2442_v44, %v1136_v56  ;;  %v1220_v59 = vadd.f32 %v2442_v44, %v1152_v57 }
 0x142   : > { %v1299_v12 = vmax.f32 %v1235_v6, 0.0  ;;  %v1315_v13 = vmax.f32 %v1251_v7, 0.0 }
 0x143   : > { %v1268_v0 = vmax.f32 %v1204_v58, 0.0  ;;  %v1284_v1 = vmax.f32 %v1220_v59, 0.0 }
 0x145   : > { %v1847_v2 = vpack.c.bf16 %v1268_v0, %v1267_v62  ;;  %v1887_v3 = vpack.c.bf16 %v1284_v1, %v1283_v63  ;;  %v879_v4 = vpop.f32.mrf.mxu2  ;;  %v919_v5 = vpop.f32.mrf.mxu3 }
 0x146   : > { %v1168_v8 = vmul.f32 %v2436_v42, %v879_v4  ;;  %v1184_v9 = vmul.f32 %v2436_v42, %v919_v5 }
 0x147   : > { %1975 = vst [vmem:[%s2459_s7 + $0x38] sm:$0xff] %v1847_v2  }
 0x148   : > { %1983 = vst [vmem:[%s2459_s7 + $0x78] sm:$0xff] %v1887_v3   ;;  %v1236_v10 = vadd.f32 %v2442_v44, %v1168_v8  ;;  %v1252_v11 = vadd.f32 %v2442_v44, %v1184_v9 }
 0x14a   : > { %v1300_v14 = vmax.f32 %v1236_v10, 0.0  ;;  %v1316_v42 = vmax.f32 %v1252_v11, 0.0 }
 0x14c   : > { %v1927_v15 = vpack.c.bf16 %v1300_v14, %v1299_v12  ;;  %v1967_v16 = vpack.c.bf16 %v1316_v42, %v1315_v13 }
 0x14e   : > { %1991 = vst [vmem:[%s2459_s7 + $0xb8] sm:$0xff] %v1927_v15  }
 0x14f   : > { %1999 = vst [vmem:[%s2459_s7 + $0xf8] sm:$0xff] %v1967_v16  }
 0x150   : > { %2190 = shalt.err (!%p2187_p12)
}
 0x151   : > { %s2254_s10 = smov 64   ;;  %s2255_s23 = smov 4  }
 0x152   : > { %2030 = dma.vmem_to_hbm [thread:$0]  (%p2362_p3), %s1460_s18, 4096, %s1462_s28, %s1446_s29, %s2254_s10, %s2254_s10, %s2255_s23  }
 0x153 PF: > { %p2047_p13 = scmp.ge.s32.totalorder %s2249_s20, 2  ;;  %s1476_s25 = sand.u32 1, %s2229_s15  }
 0x154   : > { %s1477_s30 = scalar_lea.sflag [#allocation5], %s1476_s25 }
 0x155   : > { %p2041_p0 = pnand %p2047_p13, %p2330_p6 }
 0x157   : > { %p2042_p5 = pneg %p2041_p0 }
 0x159   : > { %2224 = dma.done.wait (%p2042_p5), %s1477_s30, 4096  }
 0x15a   : > { %2226 = vsyncadd (%p2042_p5), %s1477_s30, 4294963200  ;;  %s21_s20 = sadd.s32 1, %s2249_s20   ;;  %s2665_s12 = sld [smem:[#allocation12_spill]] }
 0x15b   : > { %p18_p7 = scmp.ge.s32.totalorder %s21_s20, 6   ;;  %s2666_s15 = smov %s2233_s16 }
 0x15c   : > { %s2667_s16 = smov %s2237_s17  ;;  %s2668_s17 = smov %s2371_s22 }
 0x15d   : > { %s2669_s18 = smov %s2245_s19  ;;  %20 = sbr.rel (!%p18_p7) target bundleno = 9 (0x9), region = 100 }
 0x160   : > { %s2670_s19 = smov %s2665_s12 }
 0x162   :  { %1483 = vsyncpa [#allocation4], 1 }
 0x163   :  { %1485 = vsyncpa [#allocation4 + $0x1], 1 }
 0x164   :  { %1486 = vsyncpa [#allocation7], 1 }
 0x165   :  { %1487 = vsyncpa [#allocation5], 1 }
 0x166   :  { %1489 = vsyncpa [#allocation5 + $0x1], 1 }

</bundles_post_ra>
